<compile_context>
chip_gen: v7x
topology: tpu7x:2x2x1
jax: 0.10.0
libtpu: 0.0.40
codegen_flags: <defaults>
</compile_context>

<pallas_src>
import jax
import jax.numpy as jnp
from jax.experimental import pallas as pl
from jax.experimental.pallas import tpu as pltpu


def thai_rnn_kernel(x_ref, wih_ref, whh_ref, b_ref, wfc_ref, bfc_ref,
                    out_ref, xw_ref):
    """tanh-RNN recurrence + final linear head for one batch tile.

    x_ref   : (T*BT, D_in_p)  time-major, flattened per batch tile (row = t*BT + b)
    wih_ref : (D_in_p, Hp)    W_ih^T, padded
    whh_ref : (Hp, Hp)        W_hh^T, padded (zero rows/cols beyond H)
    b_ref   : (1, Hp)         combined b_ih + b_hh, padded
    wfc_ref : (Hp, Op)        fc weight, padded
    bfc_ref : (1, Op)         fc bias, padded
    out_ref : (BT, Op)        lane-dense output tile
    xw_ref  : (T*BT, Hp)      VMEM scratch: precomputed input projection
    """
    TB = x_ref.shape[0]
    BT = out_ref.shape[0]
    T = TB // BT

    # Prologue: project ALL timesteps with one MXU matmul and fold the bias in
    # here, so neither sits on the serial recurrence path.
    xw_ref[...] = (jnp.dot(x_ref[...], wih_ref[...],
                           preferred_element_type=jnp.float32)
                   + b_ref[...])

    whh = whh_ref[...]                      # loop-invariant, stays in vregs

    # Fully unrolled recurrence (T is static and small); h stays in vregs.
    # First step: h0 = 0 -> h1 = tanh(xw[0]); the zero matmul is skipped.
    h = jnp.tanh(xw_ref[pl.ds(0, BT), :])
    for t in range(1, T):
        h = jnp.tanh(xw_ref[pl.ds(t * BT, BT), :]
                     + jnp.dot(h, whh, preferred_element_type=jnp.float32))

    # fc on the last hidden state; (BT, Op) is a lane-dense unmasked store.
    out_ref[...] = (jnp.dot(h, wfc_ref[...],
                            preferred_element_type=jnp.float32)
                    + bfc_ref[...])


def _pad2(a, rows, cols):
    a = a.astype(jnp.float32)
    return jnp.pad(a, ((0, rows - a.shape[0]), (0, cols - a.shape[1])))


def _round_up(x, m):
    return ((x + m - 1) // m) * m


def thai_rnn_forward(initial_values, prev_time_steps, params, *,
                     batch_tile=None):
    """JAX glue + pallas_call.

    initial_values  : (B, initial_values_size)
    prev_time_steps : (B, T)  or (B, T, input_size)
    returns         : (B, output_size)
    """
    if prev_time_steps.ndim == 2:
        prev_time_steps = prev_time_steps[..., None]            # (B, T, 1)
    B, T, in_feat = prev_time_steps.shape
    IV = initial_values.shape[-1]
    D_in = IV + in_feat

    iv = jnp.broadcast_to(initial_values[:, None, :], (B, T, IV))
    rnn_input = jnp.concatenate(
        [iv.astype(jnp.float32), prev_time_steps.astype(jnp.float32)],
        axis=-1)                                                # (B, T, D_in)

    w_ih, w_hh, b, w_fc, b_fc = (params["w_ih"], params["w_hh"], params["b"],
                                 params["w_fc"], params["b_fc"])
    H = w_hh.shape[0]
    O = w_fc.shape[1]

    # Padding: hidden/output dims to 128 lanes (unmasked vregs, clean MXU
    # tiles); input feature dim to a multiple of 8 (aligned W_ih sublanes).
    # Zero padding preserves semantics exactly.
    LANE, SUBLANE = 128, 8
    Hp = _round_up(H, LANE)
    Op = _round_up(O, LANE)
    D_in_p = _round_up(D_in, SUBLANE)

    w_ih_p = _pad2(w_ih, D_in_p, Hp)
    w_hh_p = _pad2(w_hh, Hp, Hp)
    b_p = _pad2(b, 1, Hp)
    w_fc_p = _pad2(w_fc, Hp, Op)
    b_fc_p = _pad2(b_fc, 1, Op)

    # Adaptive batch tile: at least 8 (sublane), at most 128 (fills the MXU per
    # recurrence step).  Multiple tiles -> "parallel" grid axis -> megacore.
    if batch_tile is None:
        batch_tile = min(128, _round_up(B, SUBLANE))
    BT = _round_up(batch_tile, SUBLANE)
    Bp = _round_up(B, BT)
    nb = Bp // BT

    x_tm = jnp.transpose(rnn_input, (1, 0, 2))                  # (T, B, D_in)
    x_tm = jnp.pad(x_tm, ((0, 0), (0, Bp - B), (0, D_in_p - D_in)))
    # Per batch tile, flatten time-major: row index = t * BT + b_local.
    x_tiles = (x_tm.reshape(T, nb, BT, D_in_p)
                   .transpose(1, 0, 2, 3)
                   .reshape(nb, T * BT, D_in_p))                # (nb, T*BT, D_in_p)

    out_padded = pl.pallas_call(
        thai_rnn_kernel,
        out_shape=jax.ShapeDtypeStruct((Bp, Op), jnp.float32),
        grid_spec=pltpu.PrefetchScalarGridSpec(
            num_scalar_prefetch=0,
            grid=(nb,),
            in_specs=[
                pl.BlockSpec((None, T * BT, D_in_p), lambda i: (i, 0, 0)),
                pl.BlockSpec((D_in_p, Hp), lambda i: (0, 0)),
                pl.BlockSpec((Hp, Hp), lambda i: (0, 0)),
                pl.BlockSpec((1, Hp), lambda i: (0, 0)),
                pl.BlockSpec((Hp, Op), lambda i: (0, 0)),
                pl.BlockSpec((1, Op), lambda i: (0, 0)),
            ],
            out_specs=pl.BlockSpec((BT, Op), lambda i: (i, 0)),
            scratch_shapes=[pltpu.VMEM((T * BT, Hp), jnp.float32)],
        ),
        compiler_params=pltpu.CompilerParams(
            dimension_semantics=("parallel",)),
    )(x_tiles, w_ih_p, w_hh_p, b_p, w_fc_p, b_fc_p)

    return out_padded[:B, :O]


def init_params(key, initial_values_size=5, hidden_size=64,
                input_size=1, output_size=1):
    """Deterministic PyTorch-style U(-1/sqrt(H), 1/sqrt(H)) init (unpadded)."""
    d_in = input_size + initial_values_size
    k1, k2, k3, k4, k5, k6 = jax.random.split(key, 6)
    s = 1.0 / jnp.sqrt(hidden_size)
    u = lambda k, shape: jax.random.uniform(k, shape, jnp.float32, -s, s)
    w_ih = u(k1, (d_in, hidden_size))          # = W_ih^T
    w_hh = u(k2, (hidden_size, hidden_size))   # = W_hh^T
    b_ih = u(k3, (hidden_size,))
    b_hh = u(k4, (hidden_size,))
    w_fc = u(k5, (hidden_size, output_size))
    b_fc = u(k6, (output_size,))
    return {
        "w_ih": w_ih,
        "w_hh": w_hh,
        "b": (b_ih + b_hh)[None, :],
        "w_fc": w_fc,
        "b_fc": b_fc[None, :],
    }


def reference_forward(initial_values, prev_time_steps, params):
    """Pure-JAX reference (mirrors torch.nn.RNN + Linear)."""
    if prev_time_steps.ndim == 2:
        prev_time_steps = prev_time_steps[..., None]
    B, T, _ = prev_time_steps.shape
    iv = jnp.broadcast_to(initial_values[:, None, :],
                          (B, T, initial_values.shape[-1]))
    x = jnp.concatenate([iv, prev_time_steps], axis=-1)
    h = jnp.zeros((B, params["w_hh"].shape[0]), jnp.float32)
    for t in range(T):
        h = jnp.tanh(x[:, t, :] @ params["w_ih"] + h @ params["w_hh"]
                     + params["b"])
    return h @ params["w_fc"] + params["b_fc"]


if __name__ == "__main__":
    key = jax.random.PRNGKey(0)
    kp, ki, kx = jax.random.split(key, 3)

    B = 8                 # batch
    IV = 5                # initial_values_size
    T = 8                 # delta (sequence length)
    H = 64                # hidden_size (module default)
    O = 1                 # output_size

    params = init_params(kp, initial_values_size=IV, hidden_size=H,
                         input_size=1, output_size=O)

    initial_values = jax.random.normal(ki, (B, IV), jnp.float32)
    prev_time_steps = jax.random.normal(kx, (B, T), jnp.float32)

    out = thai_rnn_forward(initial_values, prev_time_steps, params)
    out = jax.block_until_ready(out)

    ref = reference_forward(initial_values, prev_time_steps, params)
    assert out.shape == (B, O)
    assert jnp.allclose(out, ref, atol=1e-4, rtol=1e-4), (out, ref)

    print("KERNEL_OK")
</pallas_src>

<mosaic_0001>
module attributes {stable_mosaic.version = 11 : i64} {
  func.func @thai_rnn_kernel(%arg0: i32, %arg1: memref<1x64x8xf32, #tpu.memory_space<vmem>>, %arg2: memref<8x128xf32, #tpu.memory_space<vmem>>, %arg3: memref<128x128xf32, #tpu.memory_space<vmem>>, %arg4: memref<1x128xf32, #tpu.memory_space<vmem>>, %arg5: memref<128x128xf32, #tpu.memory_space<vmem>>, %arg6: memref<1x128xf32, #tpu.memory_space<vmem>>, %arg7: memref<8x128xf32, #tpu.memory_space<vmem>>, %arg8: memref<64x128xf32, #tpu.memory_space<vmem>>) attributes {dimension_semantics = [#tpu.dimension_semantics<parallel>], iteration_bounds = array<i64: 1>, scalar_prefetch = 0 : i64, scratch_operands = 1 : i64, tpu.core_type = #tpu.core_type<tc>, window_params = [{transform_indices = @transform_0, window_bounds = array<i64: 1, 64, 8>}, {pipeline_mode = #tpu.pipeline_mode<synchronous>, transform_indices = @transform_1, window_bounds = array<i64: 8, 128>}, {pipeline_mode = #tpu.pipeline_mode<synchronous>, transform_indices = @transform_2, window_bounds = array<i64: 128, 128>}, {pipeline_mode = #tpu.pipeline_mode<synchronous>, transform_indices = @transform_3, window_bounds = array<i64: 1, 128>}, {pipeline_mode = #tpu.pipeline_mode<synchronous>, transform_indices = @transform_4, window_bounds = array<i64: 128, 128>}, {pipeline_mode = #tpu.pipeline_mode<synchronous>, transform_indices = @transform_5, window_bounds = array<i64: 1, 128>}, {transform_indices = @transform_6, window_bounds = array<i64: 8, 128>}]} {
    %c0 = arith.constant 0 : index
    %c0_0 = arith.constant 0 : index
    %c0_1 = arith.constant 0 : index
    %0 = vector.load %arg1[%c0, %c0_0, %c0_1] : memref<1x64x8xf32, #tpu.memory_space<vmem>>, vector<1x64x8xf32>
    %1 = vector.shape_cast %0 : vector<1x64x8xf32> to vector<64x8xf32>
    %c0_2 = arith.constant 0 : index
    %c0_3 = arith.constant 0 : index
    %2 = vector.load %arg2[%c0_2, %c0_3] : memref<8x128xf32, #tpu.memory_space<vmem>>, vector<8x128xf32>
    %cst = arith.constant dense<0.000000e+00> : vector<64x128xf32>
    %3 = tpu.matmul %1, %2, %cst {dimension_numbers = #tpu.dot_dimension_numbers<[1], [0], [0], [1], [0, 0, 1, 1], [], []>} : vector<64x8xf32>, vector<8x128xf32>, vector<64x128xf32> -> vector<64x128xf32>
    %c0_4 = arith.constant 0 : index
    %c0_5 = arith.constant 0 : index
    %4 = vector.load %arg4[%c0_4, %c0_5] : memref<1x128xf32, #tpu.memory_space<vmem>>, vector<1x128xf32>
    %5 = vector.broadcast %4 : vector<1x128xf32> to vector<64x128xf32>
    %6 = arith.addf %3, %5 : vector<64x128xf32>
    %c0_6 = arith.constant 0 : index
    %c0_7 = arith.constant 0 : index
    %7 = vector.load %arg8[%c0_6, %c0_7] : memref<64x128xf32, #tpu.memory_space<vmem>>, vector<64x128xf32>
    tpu.vector_store %arg8[%c0_6, %c0_7], %6 {strides = array<i32>} : memref<64x128xf32, #tpu.memory_space<vmem>>, vector<64x128xf32>,
    %c0_8 = arith.constant 0 : index
    %c0_9 = arith.constant 0 : index
    %8 = vector.load %arg3[%c0_8, %c0_9] : memref<128x128xf32, #tpu.memory_space<vmem>>, vector<128x128xf32>
    %c0_10 = arith.constant 0 : index
    %c0_11 = arith.constant 0 : index
    %9 = vector.load %arg8[%c0_10, %c0_11] : memref<64x128xf32, #tpu.memory_space<vmem>>, vector<8x128xf32>
    %10 = math.tanh %9 : vector<8x128xf32>
    %c8 = arith.constant 8 : index
    %c0_12 = arith.constant 0 : index
    %11 = vector.load %arg8[%c8, %c0_12] : memref<64x128xf32, #tpu.memory_space<vmem>>, vector<8x128xf32>
    %cst_13 = arith.constant dense<0.000000e+00> : vector<8x128xf32>
    %12 = tpu.matmul %10, %8, %cst_13 {dimension_numbers = #tpu.dot_dimension_numbers<[1], [0], [0], [1], [0, 0, 1, 1], [], []>} : vector<8x128xf32>, vector<128x128xf32>, vector<8x128xf32> -> vector<8x128xf32>
    %13 = arith.addf %11, %12 : vector<8x128xf32>
    %14 = math.tanh %13 : vector<8x128xf32>
    %c16 = arith.constant 16 : index
    %c0_14 = arith.constant 0 : index
    %15 = vector.load %arg8[%c16, %c0_14] : memref<64x128xf32, #tpu.memory_space<vmem>>, vector<8x128xf32>
    %cst_15 = arith.constant dense<0.000000e+00> : vector<8x128xf32>
    %16 = tpu.matmul %14, %8, %cst_15 {dimension_numbers = #tpu.dot_dimension_numbers<[1], [0], [0], [1], [0, 0, 1, 1], [], []>} : vector<8x128xf32>, vector<128x128xf32>, vector<8x128xf32> -> vector<8x128xf32>
    %17 = arith.addf %15, %16 : vector<8x128xf32>
    %18 = math.tanh %17 : vector<8x128xf32>
    %c24 = arith.constant 24 : index
    %c0_16 = arith.constant 0 : index
    %19 = vector.load %arg8[%c24, %c0_16] : memref<64x128xf32, #tpu.memory_space<vmem>>, vector<8x128xf32>
    %cst_17 = arith.constant dense<0.000000e+00> : vector<8x128xf32>
    %20 = tpu.matmul %18, %8, %cst_17 {dimension_numbers = #tpu.dot_dimension_numbers<[1], [0], [0], [1], [0, 0, 1, 1], [], []>} : vector<8x128xf32>, vector<128x128xf32>, vector<8x128xf32> -> vector<8x128xf32>
    %21 = arith.addf %19, %20 : vector<8x128xf32>
    %22 = math.tanh %21 : vector<8x128xf32>
    %c32 = arith.constant 32 : index
    %c0_18 = arith.constant 0 : index
    %23 = vector.load %arg8[%c32, %c0_18] : memref<64x128xf32, #tpu.memory_space<vmem>>, vector<8x128xf32>
    %cst_19 = arith.constant dense<0.000000e+00> : vector<8x128xf32>
    %24 = tpu.matmul %22, %8, %cst_19 {dimension_numbers = #tpu.dot_dimension_numbers<[1], [0], [0], [1], [0, 0, 1, 1], [], []>} : vector<8x128xf32>, vector<128x128xf32>, vector<8x128xf32> -> vector<8x128xf32>
    %25 = arith.addf %23, %24 : vector<8x128xf32>
    %26 = math.tanh %25 : vector<8x128xf32>
    %c40 = arith.constant 40 : index
    %c0_20 = arith.constant 0 : index
    %27 = vector.load %arg8[%c40, %c0_20] : memref<64x128xf32, #tpu.memory_space<vmem>>, vector<8x128xf32>
    %cst_21 = arith.constant dense<0.000000e+00> : vector<8x128xf32>
    %28 = tpu.matmul %26, %8, %cst_21 {dimension_numbers = #tpu.dot_dimension_numbers<[1], [0], [0], [1], [0, 0, 1, 1], [], []>} : vector<8x128xf32>, vector<128x128xf32>, vector<8x128xf32> -> vector<8x128xf32>
    %29 = arith.addf %27, %28 : vector<8x128xf32>
    %30 = math.tanh %29 : vector<8x128xf32>
    %c48 = arith.constant 48 : index
    %c0_22 = arith.constant 0 : index
    %31 = vector.load %arg8[%c48, %c0_22] : memref<64x128xf32, #tpu.memory_space<vmem>>, vector<8x128xf32>
    %cst_23 = arith.constant dense<0.000000e+00> : vector<8x128xf32>
    %32 = tpu.matmul %30, %8, %cst_23 {dimension_numbers = #tpu.dot_dimension_numbers<[1], [0], [0], [1], [0, 0, 1, 1], [], []>} : vector<8x128xf32>, vector<128x128xf32>, vector<8x128xf32> -> vector<8x128xf32>
    %33 = arith.addf %31, %32 : vector<8x128xf32>
    %34 = math.tanh %33 : vector<8x128xf32>
    %c56 = arith.constant 56 : index
    %c0_24 = arith.constant 0 : index
    %35 = vector.load %arg8[%c56, %c0_24] : memref<64x128xf32, #tpu.memory_space<vmem>>, vector<8x128xf32>
    %cst_25 = arith.constant dense<0.000000e+00> : vector<8x128xf32>
    %36 = tpu.matmul %34, %8, %cst_25 {dimension_numbers = #tpu.dot_dimension_numbers<[1], [0], [0], [1], [0, 0, 1, 1], [], []>} : vector<8x128xf32>, vector<128x128xf32>, vector<8x128xf32> -> vector<8x128xf32>
    %37 = arith.addf %35, %36 : vector<8x128xf32>
    %38 = math.tanh %37 : vector<8x128xf32>
    %c0_26 = arith.constant 0 : index
    %c0_27 = arith.constant 0 : index
    %39 = vector.load %arg5[%c0_26, %c0_27] : memref<128x128xf32, #tpu.memory_space<vmem>>, vector<128x128xf32>
    %cst_28 = arith.constant dense<0.000000e+00> : vector<8x128xf32>
    %40 = tpu.matmul %38, %39, %cst_28 {dimension_numbers = #tpu.dot_dimension_numbers<[1], [0], [0], [1], [0, 0, 1, 1], [], []>} : vector<8x128xf32>, vector<128x128xf32>, vector<8x128xf32> -> vector<8x128xf32>
    %c0_29 = arith.constant 0 : index
    %c0_30 = arith.constant 0 : index
    %41 = vector.load %arg6[%c0_29, %c0_30] : memref<1x128xf32, #tpu.memory_space<vmem>>, vector<1x128xf32>
    %42 = vector.broadcast %41 : vector<1x128xf32> to vector<8x128xf32>
    %43 = arith.addf %40, %42 : vector<8x128xf32>
    %c0_31 = arith.constant 0 : index
    %c0_32 = arith.constant 0 : index
    %44 = vector.load %arg7[%c0_31, %c0_32] : memref<8x128xf32, #tpu.memory_space<vmem>>, vector<8x128xf32>
    tpu.vector_store %arg7[%c0_31, %c0_32], %43 {strides = array<i32>} : memref<8x128xf32, #tpu.memory_space<vmem>>, vector<8x128xf32>,
    return
  }
  func.func @transform_0(%arg0: i32) -> (i32, i32, i32) {
    %c0_i32 = arith.constant 0 : i32
    %c0_i32_0 = arith.constant 0 : i32
    %c0_i32_1 = arith.constant 0 : i32
    return %arg0, %c0_i32, %c0_i32_0 : i32, i32, i32
  }
  func.func @transform_1(%arg0: i32) -> (i32, i32) {
    %c0_i32 = arith.constant 0 : i32
    %c0_i32_0 = arith.constant 0 : i32
    %c0_i32_1 = arith.constant 0 : i32
    return %c0_i32, %c0_i32_0 : i32, i32
  }
  func.func @transform_2(%arg0: i32) -> (i32, i32) {
    %c0_i32 = arith.constant 0 : i32
    %c0_i32_0 = arith.constant 0 : i32
    %c0_i32_1 = arith.constant 0 : i32
    return %c0_i32, %c0_i32_0 : i32, i32
  }
  func.func @transform_3(%arg0: i32) -> (i32, i32) {
    %c0_i32 = arith.constant 0 : i32
    %c0_i32_0 = arith.constant 0 : i32
    %c0_i32_1 = arith.constant 0 : i32
    return %c0_i32, %c0_i32_0 : i32, i32
  }
  func.func @transform_4(%arg0: i32) -> (i32, i32) {
    %c0_i32 = arith.constant 0 : i32
    %c0_i32_0 = arith.constant 0 : i32
    %c0_i32_1 = arith.constant 0 : i32
    return %c0_i32, %c0_i32_0 : i32, i32
  }
  func.func @transform_5(%arg0: i32) -> (i32, i32) {
    %c0_i32 = arith.constant 0 : i32
    %c0_i32_0 = arith.constant 0 : i32
    %c0_i32_1 = arith.constant 0 : i32
    return %c0_i32, %c0_i32_0 : i32, i32
  }
  func.func @transform_6(%arg0: i32) -> (i32, i32) {
    %c0_i32 = arith.constant 0 : i32
    %c0_i32_0 = arith.constant 0 : i32
    return %arg0, %c0_i32 : i32, i32
  }
}

</mosaic_0001>

<bundles_post_ra>
// kernel: tpu_custom_call.1
= control target key start
LH: loop header
LB: loop body
LE: loop exit
PB: predicated region body
PF: predicated region fallthrough
CT: control target
= control target key end

     0   :  { %11 = vsyncpa [#allocation4], 0  ;;  %s1873_s0 = inlined_call_operand.vmem [shape: f32[1,64,8], index: 0, kind: input, shape index: {}]   ;;  %s1874_s1 = inlined_call_operand.vmem [shape: f32[8,128], index: 1, kind: input, shape index: {}]   ;;  %s1875_s2 = inlined_call_operand.hbm [shape: f32[128,128], index: 2, kind: input, shape index: {}]   ;;  %s1876_s3 = inlined_call_operand.vmem [shape: f32[1,128], index: 3, kind: input, shape index: {}]   ;;  %s1877_s4 = inlined_call_operand.hbm [shape: f32[128,128], index: 4, kind: input, shape index: {}]   ;;  %s1878_s5 = inlined_call_operand.vmem [shape: f32[1,128], index: 5, kind: input, shape index: {}]   ;;  %s1879_s6 = inlined_call_operand.hbm [shape: f32[8,128], index: 6, kind: output, shape index: {}]  }
   0x1   :  { %12 = vsyncpa [#allocation7], 0 }
   0x2   :  { %13 = vsyncpa [#allocation5], 0  ;;  %s1582_s21 = smov [#allocation3]   ;;  %s1510_s25 = scalar_lea.hbm %s1875_s2, 2048 }
   0x3   :  { %s23_s22 = sshll.u32 %s1582_s21, 4  ;;  %p1511_p0 = scmp.ne.s32.totalorder %s1875_s2, %s1510_s25  ;;  %s24_s22 = int_to_ptr.vmem [resolvable:$true] %s23_s22 }
   0x4   :  { %p1514_p1 = scmp.lt.u32.totalorder %s1510_s25, %s1875_s2 }
   0x6   :  { %p1516_p2 = pnand %p1514_p1, %p1511_p0 }
   0x8   :  { %1519 = shalt.err (!%p1516_p2)
}
   0x9   :  { %s1520_s30 = scalar_lea.vmem %s24_s22, 2048  ;;  %p1525_p4 = scmp.lt.s32.totalorder %s24_s22, %s24_s22 }
   0xa   :  { %p1521_p3 = scmp.ne.s32.totalorder %s24_s22, %s1520_s30  ;;  %p1526_p5 = scmp.lt.s32.totalorder %s1520_s30, %s1520_s30 }
   0xc   :  { %p1527_p6 = por %p1526_p5, %p1525_p4 }
   0xe   :  { %p1528_p7 = pnand %p1527_p6, %p1521_p3 }
  0x10   :  { %1531 = shalt.err (!%p1528_p7)
}
  0x11   :  { %s1583_s7 = smov 128   ;;  %s1584_s8 = smov 8  }
  0x12   :  { %29 = dma.hbm_to_vmem [thread:$0]  %s1875_s2, 2048, %s24_s22, [#allocation4], %s1583_s7, %s1583_s7, %s1584_s8  }
  0x13   :  { %s1585_s11 = smov [#allocation6]   ;;  %s1532_s15 = scalar_lea.hbm %s1877_s4, 2048 }
  0x14   :  { %s37_s12 = sshll.u32 %s1585_s11, 4  ;;  %p1533_p8 = scmp.ne.s32.totalorder %s1877_s4, %s1532_s15  ;;  %s38_s12 = int_to_ptr.vmem [resolvable:$true] %s37_s12 }
  0x15   :  { %p1536_p9 = scmp.lt.u32.totalorder %s1532_s15, %s1877_s4 }
  0x17   :  { %p1538_p10 = pnand %p1536_p9, %p1533_p8 }
  0x19   :  { %1541 = shalt.err (!%p1538_p10)
}
  0x1a   :  { %s1542_s20 = scalar_lea.vmem %s38_s12, 2048  ;;  %p1547_p12 = scmp.lt.s32.totalorder %s38_s12, %s38_s12 }
  0x1b   :  { %p1543_p11 = scmp.ne.s32.totalorder %s38_s12, %s1542_s20  ;;  %p1548_p13 = scmp.lt.s32.totalorder %s1542_s20, %s1542_s20 }
  0x1d   :  { %p1549_p0 = por %p1548_p13, %p1547_p12 }
  0x1f   :  { %p1550_p1 = pnand %p1549_p0, %p1543_p11 }
  0x21   :  { %1553 = shalt.err (!%p1550_p1)
}
  0x22   :  { %43 = dma.hbm_to_vmem [thread:$0]  %s1877_s4, 2048, %s38_s12, [#allocation7], %s1583_s7, %s1583_s7, %s1584_s8  }
  0x23   :  { %1576 = dma.done.wait [#allocation4], 2048  }
  0x24   :  { %1577 = vsyncadd [#allocation4], 4294965248 }
  0x25   :  { %1578 = dma.done.wait [#allocation7], 2048  }
  0x26   :  { %1579 = vsyncadd [#allocation7], 4294965248  ;;  %v1586_v0 = vmov 0.0|0.0   ;;  %vm68_vm0 = vcmask 64512   ;;  %v60_v1 = vld [vmem:[%s1874_s1] sm:$0xff]  ;;  %v53_v3 = vld [vmem:[%s1873_s0 + $0x8] sm:$0xff] }
  0x27   :  { %1294 = vmatprep.subr.bf16.mxu1 %v1586_v0  ;;  %v52_v2 = vld [vmem:[%s1873_s0] sm:$0xff]  ;;  %1000 = vmatprep.subr.mxu0 %v60_v1  ;;  %v207_v5 = vld [vmem:[#allocation3 + $0x8] sm:$0xff]  ;;  %v208_v6 = vld [vmem:[#allocation3 + $0x10] sm:$0xff]  ;;  %vm1587_vm1 = vmmov 0   ;;  %v1588_v27 = vmov 0.0   ;;  %s1589_s16 = smov [#allocation8]  }
  0x28   :  { %1002 = vmatprep.mubr.msk.f32.mxu0 %vm68_vm0, %v52_v2  ;;  %v206_v4 = vld [vmem:[#allocation3] sm:$0xff]  ;;  %1001 = vmatpush3.msra.mxu0 %v60_v1  ;;  %v209_v8 = vld [vmem:[#allocation3 + $0x18] sm:$0xff]  ;;  %v211_v11 = vld [vmem:[#allocation3 + $0x28] sm:$0xff]  ;;  %s835_s17 = sshll.u32 %s1589_s16, 4  ;;  %s836_s17 = int_to_ptr.vmem [resolvable:$true] %s835_s17 }
  0x29   :  { %v1660_v7 = vpack.c.bf16 %v207_v5, %v206_v4  ;;  %1003 = vmatmul.mubr.msk.f32.vlgmr.msra.gmra.mrb[0].mxu0 %vm68_vm0, %v53_v3  ;;  %1318 = vmatprep.subr.bf16.mxu0 %v1586_v0  ;;  %v1665_v9 = vpack.c.bf16 %v209_v8, %v208_v6  ;;  %v210_v10 = vld [vmem:[#allocation3 + $0x20] sm:$0xff]  ;;  %v212_v13 = vld [vmem:[#allocation3 + $0x30] sm:$0xff]  ;;  %v213_v14 = vld [vmem:[#allocation3 + $0x38] sm:$0xff]  ;;  %s1554_s18 = scalar_lea.vmem %s836_s17, 128  ;;  %p1559_p3 = scmp.lt.s32.totalorder %s836_s17, %s836_s17 }
  0x2a   :  { %v1671_v12 = vpack.c.bf16 %v211_v11, %v210_v10  ;;  %v1677_v15 = vpack.c.bf16 %v213_v14, %v212_v13  ;;  %v214_v16 = vld [vmem:[#allocation3 + $0x40] sm:$0xff]  ;;  %v215_v17 = vld [vmem:[#allocation3 + $0x48] sm:$0xff]  ;;  %v216_v19 = vld [vmem:[#allocation3 + $0x50] sm:$0xff]  ;;  %1046 = vmatprep.mubr.msk.f32.mxu1 %vm1587_vm1, %v1588_v27  ;;  %p1555_p2 = scmp.ne.s32.totalorder %s836_s17, %s1554_s18  ;;  %p1560_p4 = scmp.lt.s32.totalorder %s1554_s18, %s1554_s18 }
  0x2b   :  { %1296 = vmatpush3.bf16.msra.mxu1 %v1660_v7  ;;  %1320 = vmatpush3.bf16.msra.mxu0 %v1660_v7  ;;  %v1686_v18 = vpack.c.bf16 %v215_v17, %v214_v16  ;;  %v217_v20 = vld [vmem:[#allocation3 + $0x58] sm:$0xff]  ;;  %v218_v22 = vld [vmem:[#allocation3 + $0x60] sm:$0xff]  ;;  %v219_v23 = vld [vmem:[#allocation3 + $0x68] sm:$0xff] }
  0x2c   :  { %1297 = vmatprep.subr.bf16.mxu1 %v1586_v0  ;;  %1321 = vmatprep.subr.bf16.mxu0 %v1586_v0  ;;  %v1692_v21 = vpack.c.bf16 %v217_v20, %v216_v19  ;;  %v1697_v24 = vpack.c.bf16 %v219_v23, %v218_v22  ;;  %v220_v25 = vld [vmem:[#allocation3 + $0x70] sm:$0xff]  ;;  %v221_v26 = vld [vmem:[#allocation3 + $0x78] sm:$0xff]  ;;  %v1719_v30 = vld [vmem:[%s1876_s3] ss:$0 sm:$0xff]  ;;  %p1561_p5 = por %p1560_p4, %p1559_p3 }
  0x2d   :  { %v1703_v28 = vpack.c.bf16 %v221_v26, %v220_v25  ;;  %v54_v29 = vld [vmem:[%s1873_s0 + $0x10] sm:$0xff]  ;;  %v55_v35 = vld [vmem:[%s1873_s0 + $0x18] sm:$0xff]  ;;  %v56_v36 = vld [vmem:[%s1873_s0 + $0x20] sm:$0xff] }
  0x2e   :  { %1005 = vmatprep.mubr.msk.f32.mxu0 %vm68_vm0, %v54_v29  ;;  %v57_v37 = vld [vmem:[%s1873_s0 + $0x28] sm:$0xff]  ;;  %v58_v38 = vld [vmem:[%s1873_s0 + $0x30] sm:$0xff]  ;;  %v59_v39 = vld [vmem:[%s1873_s0 + $0x38] sm:$0xff]  ;;  %p1562_p6 = pnand %p1561_p5, %p1555_p2 }
  0x2f   :  { %1299 = vmatpush3.bf16.msra.mxu1 %v1665_v9  ;;  %1323 = vmatpush3.bf16.msra.mxu0 %v1665_v9  ;;  %v735_v8 = vld [vmem:[#allocation6] sm:$0xff]  ;;  %v737_v10 = vld [vmem:[#allocation6 + $0x10] sm:$0xff]  ;;  %v746_v29 = vld [vmem:[#allocation6 + $0x58] sm:$0xff] }
  0x30   :  { %1300 = vmatprep.subr.bf16.mxu1 %v1586_v0  ;;  %1324 = vmatprep.subr.bf16.mxu0 %v1586_v0  ;;  %v739_v14 = vld [vmem:[#allocation6 + $0x20] sm:$0xff]  ;;  %v741_v17 = vld [vmem:[#allocation6 + $0x30] sm:$0xff] }
  0x31   :  { %1006 = vmatmul.mubr.msk.f32.gmra.mrb[2].mxu0 %vm68_vm0, %v55_v35  ;;  %v743_v20 = vld [vmem:[#allocation6 + $0x40] sm:$0xff]  ;;  %v749_v35 = vld [vmem:[#allocation6 + $0x70] sm:$0xff] }
  0x32   :  { %1008 = vmatprep.mubr.msk.f32.mxu0 %vm68_vm0, %v56_v36  ;;  %v750_v36 = vld [vmem:[#allocation6 + $0x78] sm:$0xff] }
  0x33   :  { %1302 = vmatpush3.bf16.msra.mxu1 %v1671_v12  ;;  %1326 = vmatpush3.bf16.msra.mxu0 %v1671_v12 }
  0x34   :  { %1303 = vmatprep.subr.bf16.mxu1 %v1586_v0  ;;  %1327 = vmatprep.subr.bf16.mxu0 %v1586_v0 }
  0x35   :  { %1009 = vmatmul.mubr.msk.f32.gmra.mrb[4].mxu0 %vm68_vm0, %v57_v37  ;;  %v1484_v37 = vpack.c.bf16 %v750_v36, %v749_v35 }
  0x36   :  { %1011 = vmatprep.mubr.msk.f32.mxu0 %vm68_vm0, %v58_v38 }
  0x37   :  { %1305 = vmatpush3.bf16.msra.mxu1 %v1677_v15  ;;  %1329 = vmatpush3.bf16.msra.mxu0 %v1677_v15 }
  0x38   :  { %1306 = vmatprep.subr.bf16.mxu1 %v1586_v0  ;;  %1330 = vmatprep.subr.bf16.mxu0 %v1586_v0 }
  0x39   :  { %1012 = vmatmul.mubr.msk.f32.gmra.mrb[6].mxu0 %vm68_vm0, %v59_v39 }
  0x3a   :  { %1081 = vmatprep.mubr.msk.f32.mxu0 %vm1587_vm1, %v1588_v27 }
  0x3b   :  { %1308 = vmatpush3.bf16.msra.mxu1 %v1686_v18  ;;  %1332 = vmatpush3.bf16.msra.mxu0 %v1686_v18 }
  0x3c   :  { %1309 = vmatprep.subr.bf16.mxu1 %v1586_v0  ;;  %1333 = vmatprep.subr.bf16.mxu0 %v1586_v0 }
  0x3f   :  { %1311 = vmatpush3.bf16.msra.mxu1 %v1692_v21  ;;  %1335 = vmatpush3.bf16.msra.mxu0 %v1692_v21 }
  0x40   :  { %1312 = vmatprep.subr.bf16.mxu1 %v1586_v0  ;;  %1336 = vmatprep.subr.bf16.mxu0 %v1586_v0 }
  0x43   :  { %1314 = vmatpush3.bf16.msra.mxu1 %v1697_v24  ;;  %1338 = vmatpush3.bf16.msra.mxu0 %v1697_v24 }
  0x44   :  { %1315 = vmatprep.subr.bf16.mxu1 %v1586_v0  ;;  %1339 = vmatprep.subr.bf16.mxu0 %v1586_v0 }
  0x47   :  { %1317 = vmatpush3.bf16.msra.mxu1 %v1703_v28  ;;  %1341 = vmatpush3.bf16.msra.mxu0 %v1703_v28 }
  0x48   :  { %1342 = vmatprep.subr.bf16.mxu1 %v1586_v0  ;;  %1366 = vmatprep.subr.bf16.mxu0 %v1586_v0 }
  0xfc   :  { %v1004_v31 = vpop.f32.mrb[0].mxu0 }
  0xfd   :  { %v159_v32 = vpop.f32.mrb[1].mxu0  ;;  %v165_v40 = vadd.f32 %v1004_v31, %v1719_v30 }
  0xfe   :  { %v160_v33 = vadd.f32 %v1719_v30, %v159_v32  ;;  %v747_v32 = vld [vmem:[#allocation6 + $0x60] sm:$0xff] }
 0x100   :  { %1494 = vtanh.f32 %v160_v33  ;;  %v748_v33 = vld [vmem:[#allocation6 + $0x68] sm:$0xff] }
 0x104   :  { %v1007_v45 = vpop.f32.mrb[2].mxu0 }
 0x105   :  { %v169_v46 = vpop.f32.mrb[3].mxu0  ;;  %v175_v56 = vadd.f32 %v1007_v45, %v1719_v30 }
 0x106   :  { %v170_v51 = vadd.f32 %v1719_v30, %v169_v46 }
 0x108   :  { %v1781_v47 = vpop.f32.mrb[4].mxu0 }
 0x109   :  { %v179_v48 = vpop.f32.mrb[5].mxu0  ;;  %v185_v3 = vadd.f32 %v1781_v47, %v1719_v30 }
 0x10a   :  { %v1495_v34 = vpop.eup %1494  ;;  %v180_v61 = vadd.f32 %v1719_v30, %v179_v48 }
 0x10b   :  { %1047 = vmatmul.mubr.f32.vlgmr.msra.gmra.mrb[0].mxu1 %v1495_v34  ;;  %v1481_v34 = vpack.c.bf16 %v748_v33, %v747_v32 }
 0x10c   :  { %1344 = vmatpush3.bf16.msra.mxu1 %v1660_v7  ;;  %1116 = vmatprep.mubr.msk.f32.mxu1 %vm1587_vm1, %v1588_v27  ;;  %v1783_v49 = vpop.f32.mrb[6].mxu0 }
 0x10d   :  { %1345 = vmatprep.subr.bf16.mxu1 %v1586_v0  ;;  %v1785_v50 = vpop.f32.mrb[7].mxu0  ;;  %v195_v38 = vadd.f32 %v1783_v49, %v1719_v30 }
 0x10e   :  { %v190_v23 = vadd.f32 %v1719_v30, %v1785_v50 }
 0x110   :  { %1347 = vmatpush3.bf16.msra.mxu1 %v1665_v9 }
 0x111   :  { %1348 = vmatprep.subr.bf16.mxu1 %v1586_v0 }
 0x114   :  { %1350 = vmatpush3.bf16.msra.mxu1 %v1671_v12 }
 0x115   :  { %1351 = vmatprep.subr.bf16.mxu1 %v1586_v0 }
 0x118   :  { %1353 = vmatpush3.bf16.msra.mxu1 %v1677_v15 }
 0x119   :  { %1354 = vmatprep.subr.bf16.mxu1 %v1586_v0 }
 0x11c   :  { %1356 = vmatpush3.bf16.msra.mxu1 %v1686_v18 }
 0x11d   :  { %1357 = vmatprep.subr.bf16.mxu1 %v1586_v0 }
 0x120   :  { %1359 = vmatpush3.bf16.msra.mxu1 %v1692_v21 }
 0x121   :  { %1360 = vmatprep.subr.bf16.mxu1 %v1586_v0 }
 0x124   :  { %1362 = vmatpush3.bf16.msra.mxu1 %v1697_v24 }
 0x125   :  { %1363 = vmatprep.subr.bf16.mxu1 %v1586_v0 }
 0x128   :  { %1365 = vmatpush3.bf16.msra.mxu1 %v1703_v28 }
 0x129   :  { %1390 = vmatprep.subr.bf16.mxu1 %v1586_v0 }
 0x1de   :  { %v291_v41 = vpop.f32.mrb[0].mxu1 }
 0x1df   :  { %v295_v42 = vadd.f32 %v291_v41, %v165_v40  ;;  %v1048_v43 = vpop.f32.mrb[1].mxu1 }
 0x1e0   :  { %v854_v43 = vld [vmem:[%s1878_s5] ss:$0 sm:$0xff] }
 0x1e1   :  { %1496 = vtanh.f32 %v295_v42 }
 0x1eb   :  { %v1497_v44 = vpop.eup %1496 }
 0x1ec   :  { %1082 = vmatmul.mubr.f32.vlgmr.msra.gmra.mrb[8].mxu0 %v1497_v44 }
 0x1ed   :  { %1368 = vmatpush3.bf16.msra.mxu0 %v1660_v7  ;;  %1151 = vmatprep.mubr.msk.f32.mxu0 %vm1587_vm1, %v1588_v27 }
 0x1ee   :  { %1369 = vmatprep.subr.bf16.mxu0 %v1586_v0 }
 0x1f1   :  { %1371 = vmatpush3.bf16.msra.mxu0 %v1665_v9 }
 0x1f2   :  { %1372 = vmatprep.subr.bf16.mxu0 %v1586_v0 }
 0x1f5   :  { %1374 = vmatpush3.bf16.msra.mxu0 %v1671_v12 }
 0x1f6   :  { %1375 = vmatprep.subr.bf16.mxu0 %v1586_v0 }
 0x1f9   :  { %1377 = vmatpush3.bf16.msra.mxu0 %v1677_v15 }
 0x1fa   :  { %1378 = vmatprep.subr.bf16.mxu0 %v1586_v0 }
 0x1fd   :  { %1380 = vmatpush3.bf16.msra.mxu0 %v1686_v18 }
 0x1fe   :  { %1381 = vmatprep.subr.bf16.mxu0 %v1586_v0 }
 0x201   :  { %1383 = vmatpush3.bf16.msra.mxu0 %v1692_v21 }
 0x202   :  { %1384 = vmatprep.subr.bf16.mxu0 %v1586_v0 }
 0x205   :  { %1386 = vmatpush3.bf16.msra.mxu0 %v1697_v24 }
 0x206   :  { %1387 = vmatprep.subr.bf16.mxu0 %v1586_v0 }
 0x209   :  { %1389 = vmatpush3.bf16.msra.mxu0 %v1703_v28 }
 0x20a   :  { %1414 = vmatprep.subr.bf16.mxu0 %v1586_v0 }
 0x2bf   :  { %v364_v52 = vpop.f32.mrb[8].mxu0 }
 0x2c0   :  { %v368_v53 = vadd.f32 %v364_v52, %v170_v51  ;;  %v1083_v54 = vpop.f32.mrb[9].mxu0 }
 0x2c2   :  { %1498 = vtanh.f32 %v368_v53 }
 0x2cc   :  { %v1499_v55 = vpop.eup %1498 }
 0x2cd   :  { %1117 = vmatmul.mubr.f32.vlgmr.msra.gmra.mrb[2].mxu1 %v1499_v55 }
 0x2ce   :  { %1392 = vmatpush3.bf16.msra.mxu1 %v1660_v7  ;;  %1186 = vmatprep.mubr.msk.f32.mxu1 %vm1587_vm1, %v1588_v27 }
 0x2cf   :  { %1393 = vmatprep.subr.bf16.mxu1 %v1586_v0 }
 0x2d2   :  { %1395 = vmatpush3.bf16.msra.mxu1 %v1665_v9 }
 0x2d3   :  { %1396 = vmatprep.subr.bf16.mxu1 %v1586_v0 }
 0x2d6   :  { %1398 = vmatpush3.bf16.msra.mxu1 %v1671_v12 }
 0x2d7   :  { %1399 = vmatprep.subr.bf16.mxu1 %v1586_v0 }
 0x2da   :  { %1401 = vmatpush3.bf16.msra.mxu1 %v1677_v15 }
 0x2db   :  { %1402 = vmatprep.subr.bf16.mxu1 %v1586_v0 }
 0x2de   :  { %1404 = vmatpush3.bf16.msra.mxu1 %v1686_v18 }
 0x2df   :  { %1405 = vmatprep.subr.bf16.mxu1 %v1586_v0 }
 0x2e2   :  { %1407 = vmatpush3.bf16.msra.mxu1 %v1692_v21 }
 0x2e3   :  { %1408 = vmatprep.subr.bf16.mxu1 %v1586_v0 }
 0x2e6   :  { %1410 = vmatpush3.bf16.msra.mxu1 %v1697_v24 }
 0x2e7   :  { %1411 = vmatprep.subr.bf16.mxu1 %v1586_v0 }
 0x2ea   :  { %1413 = vmatpush3.bf16.msra.mxu1 %v1703_v28 }
 0x2eb   :  { %1438 = vmatprep.subr.bf16.mxu1 %v1586_v0 }
 0x3a0   :  { %v437_v57 = vpop.f32.mrb[2].mxu1 }
 0x3a1   :  { %v441_v58 = vadd.f32 %v437_v57, %v175_v56  ;;  %v1118_v59 = vpop.f32.mrb[3].mxu1 }
 0x3a3   :  { %1500 = vtanh.f32 %v441_v58 }
 0x3ad   :  { %v1501_v60 = vpop.eup %1500 }
 0x3ae   :  { %1152 = vmatmul.mubr.f32.vlgmr.msra.gmra.mrb[10].mxu0 %v1501_v60 }
 0x3af   :  { %1416 = vmatpush3.bf16.msra.mxu0 %v1660_v7  ;;  %1221 = vmatprep.mubr.msk.f32.mxu0 %vm1587_vm1, %v1588_v27 }
 0x3b0   :  { %1417 = vmatprep.subr.bf16.mxu0 %v1586_v0 }
 0x3b3   :  { %1419 = vmatpush3.bf16.msra.mxu0 %v1665_v9 }
 0x3b4   :  { %1420 = vmatprep.subr.bf16.mxu0 %v1586_v0 }
 0x3b7   :  { %1422 = vmatpush3.bf16.msra.mxu0 %v1671_v12 }
 0x3b8   :  { %1423 = vmatprep.subr.bf16.mxu0 %v1586_v0 }
 0x3bb   :  { %1425 = vmatpush3.bf16.msra.mxu0 %v1677_v15 }
 0x3bc   :  { %1426 = vmatprep.subr.bf16.mxu0 %v1586_v0 }
 0x3bf   :  { %1428 = vmatpush3.bf16.msra.mxu0 %v1686_v18 }
 0x3c0   :  { %1429 = vmatprep.subr.bf16.mxu0 %v1586_v0 }
 0x3c3   :  { %1431 = vmatpush3.bf16.msra.mxu0 %v1692_v21 }
 0x3c4   :  { %1432 = vmatprep.subr.bf16.mxu0 %v1586_v0 }
 0x3c7   :  { %1434 = vmatpush3.bf16.msra.mxu0 %v1697_v24 }
 0x3c8   :  { %1435 = vmatprep.subr.bf16.mxu0 %v1586_v0 }
 0x3cb   :  { %1437 = vmatpush3.bf16.msra.mxu0 %v1703_v28 }
 0x3cc   :  { %1462 = vmatprep.subr.bf16.mxu0 %v1586_v0 }
 0x481   :  { %v510_v62 = vpop.f32.mrb[10].mxu0 }
 0x482   :  { %v514_v63 = vadd.f32 %v510_v62, %v180_v61  ;;  %v1153_v1 = vpop.f32.mrb[11].mxu0 }
 0x484   :  { %1502 = vtanh.f32 %v514_v63 }
 0x48e   :  { %v1503_v2 = vpop.eup %1502 }
 0x48f   :  { %1187 = vmatmul.mubr.f32.vlgmr.msra.gmra.mrb[4].mxu1 %v1503_v2 }
 0x490   :  { %1440 = vmatpush3.bf16.msra.mxu1 %v1660_v7  ;;  %1256 = vmatprep.mubr.msk.f32.mxu1 %vm1587_vm1, %v1588_v27 }
 0x491   :  { %1441 = vmatprep.subr.bf16.mxu1 %v1586_v0 }
 0x494   :  { %1443 = vmatpush3.bf16.msra.mxu1 %v1665_v9  ;;  %v736_v9 = vld [vmem:[#allocation6 + $0x8] sm:$0xff] }
 0x495   :  { %1444 = vmatprep.subr.bf16.mxu1 %v1586_v0  ;;  %v1463_v11 = vpack.c.bf16 %v736_v9, %v735_v8 }
 0x498   :  { %1446 = vmatpush3.bf16.msra.mxu1 %v1671_v12  ;;  %v738_v12 = vld [vmem:[#allocation6 + $0x18] sm:$0xff] }
 0x499   :  { %1447 = vmatprep.subr.bf16.mxu1 %v1586_v0  ;;  %v1466_v13 = vpack.c.bf16 %v738_v12, %v737_v10 }
 0x49c   :  { %1449 = vmatpush3.bf16.msra.mxu1 %v1677_v15  ;;  %v740_v15 = vld [vmem:[#allocation6 + $0x28] sm:$0xff] }
 0x49d   :  { %1450 = vmatprep.subr.bf16.mxu1 %v1586_v0  ;;  %v1469_v16 = vpack.c.bf16 %v740_v15, %v739_v14 }
 0x4a0   :  { %1452 = vmatpush3.bf16.msra.mxu1 %v1686_v18  ;;  %v742_v18 = vld [vmem:[#allocation6 + $0x38] sm:$0xff] }
 0x4a1   :  { %1453 = vmatprep.subr.bf16.mxu1 %v1586_v0  ;;  %v1472_v19 = vpack.c.bf16 %v742_v18, %v741_v17 }
 0x4a4   :  { %1455 = vmatpush3.bf16.msra.mxu1 %v1692_v21  ;;  %v744_v21 = vld [vmem:[#allocation6 + $0x48] sm:$0xff] }
 0x4a5   :  { %1456 = vmatprep.subr.bf16.mxu1 %v1586_v0  ;;  %v1475_v22 = vpack.c.bf16 %v744_v21, %v743_v20 }
 0x4a8   :  { %1458 = vmatpush3.bf16.msra.mxu1 %v1697_v24 }
 0x4a9   :  { %1459 = vmatprep.subr.bf16.mxu1 %v1586_v0 }
 0x4ac   :  { %1461 = vmatpush3.bf16.msra.mxu1 %v1703_v28  ;;  %v745_v28 = vld [vmem:[#allocation6 + $0x50] sm:$0xff] }
 0x4ad   :  { %v1478_v31 = vpack.c.bf16 %v746_v29, %v745_v28 }
 0x562   :  { %v583_v4 = vpop.f32.mrb[4].mxu1 }
 0x563   :  { %v587_v5 = vadd.f32 %v583_v4, %v185_v3  ;;  %v1188_v6 = vpop.f32.mrb[5].mxu1 }
 0x565   :  { %1504 = vtanh.f32 %v587_v5 }
 0x56f   :  { %v1505_v7 = vpop.eup %1504 }
 0x570   :  { %1222 = vmatmul.mubr.f32.vlgmr.msra.gmra.mrb[12].mxu0 %v1505_v7 }
 0x571   :  { %1291 = vmatprep.mubr.msk.f32.mxu0 %vm1587_vm1, %v1588_v27  ;;  %1464 = vmatpush3.bf16.msra.mxu0 %v1463_v11 }
 0x572   :  { %1465 = vmatprep.subr.bf16.mxu0 %v1586_v0 }
 0x575   :  { %1467 = vmatpush3.bf16.msra.mxu0 %v1466_v13 }
 0x576   :  { %1468 = vmatprep.subr.bf16.mxu0 %v1586_v0 }
 0x579   :  { %1470 = vmatpush3.bf16.msra.mxu0 %v1469_v16 }
 0x57a   :  { %1471 = vmatprep.subr.bf16.mxu0 %v1586_v0 }
 0x57d   :  { %1473 = vmatpush3.bf16.msra.mxu0 %v1472_v19 }
 0x57e   :  { %1474 = vmatprep.subr.bf16.mxu0 %v1586_v0 }
 0x581   :  { %1476 = vmatpush3.bf16.msra.mxu0 %v1475_v22 }
 0x582   :  { %1477 = vmatprep.subr.bf16.mxu0 %v1586_v0 }
 0x585   :  { %1479 = vmatpush3.bf16.msra.mxu0 %v1478_v31 }
 0x586   :  { %1480 = vmatprep.subr.bf16.mxu0 %v1586_v0 }
 0x589   :  { %1482 = vmatpush3.bf16.msra.mxu0 %v1481_v34 }
 0x58a   :  { %1483 = vmatprep.subr.bf16.mxu0 %v1586_v0 }
 0x58d   :  { %1485 = vmatpush3.bf16.msra.mxu0 %v1484_v37 }
 0x643   :  { %v656_v24 = vpop.f32.mrb[12].mxu0 }
 0x644   :  { %v660_v25 = vadd.f32 %v656_v24, %v190_v23  ;;  %v1223_v26 = vpop.f32.mrb[13].mxu0 }
 0x646   :  { %1506 = vtanh.f32 %v660_v25 }
 0x650   :  { %v1507_v27 = vpop.eup %1506 }
 0x651   :  { %1257 = vmatmul.mubr.f32.vlgmr.msra.gmra.mrb[6].mxu1 %v1507_v27 }
 0x724   :  { %v729_v39 = vpop.f32.mrb[6].mxu1 }
 0x725   :  { %v733_v40 = vadd.f32 %v729_v39, %v195_v38  ;;  %v1258_v41 = vpop.f32.mrb[7].mxu1 }
 0x727   :  { %1508 = vtanh.f32 %v733_v40 }
 0x731   :  { %v1509_v42 = vpop.eup %1508 }
 0x732   :  { %1292 = vmatmul.mubr.f32.vlgmr.msra.gmra.mrb[14].mxu0 %v1509_v42 }
 0x805   :  { %v824_v44 = vpop.f32.mrb[14].mxu0 }
 0x806   :  { %v825_v45 = vadd.f32 %v854_v43, %v824_v44  ;;  %v1293_v46 = vpop.f32.mrb[15].mxu0 }
 0x808   :  { %828 = vst [vmem:[#allocation8] sm:$0xff] %v825_v45 }
 0x809   :  { %1565 = shalt.err (!%p1562_p6)
}
 0x80a   :  { %s1566_s2 = scalar_lea.hbm %s1879_s6, 128 }
 0x80b   :  { %p1567_p7 = scmp.ne.s32.totalorder %s1879_s6, %s1566_s2  ;;  %p1570_p8 = scmp.lt.u32.totalorder %s1566_s2, %s1879_s6 }
 0x80d   :  { %p1572_p9 = pnand %p1570_p8, %p1567_p7 }
 0x80f   :  { %1575 = shalt.err (!%p1572_p9)
}
 0x810   :  { %838 = dma.vmem_to_hbm [thread:$0]  %s836_s17, 128, %s1879_s6, [#allocation5]  }
 0x811   :  { %1580 = dma.done.wait [#allocation5], 128  }
 0x812   :  { %1581 = vsyncadd [#allocation5], 4294967168 }
 0x813   :  { %842 = vsyncpa [#allocation4], 1 }
 0x814   :  { %843 = vsyncpa [#allocation7], 1 }
 0x815   :  { %844 = vsyncpa [#allocation5], 1 }

</bundles_post_ra>
